<compile_context>
chip_gen: v7x
topology: tpu7x:2x2x1
jax: 0.10.0
libtpu: 0.0.40
codegen_flags: <defaults>
</compile_context>

<pallas_src>
import math

import jax
import jax.numpy as jnp
from jax import lax
from jax.experimental import pallas as pl
from jax.experimental.pallas import tpu as pltpu

EPS = 1e-5


def _expand_norm_kernel(x_ref, w_ref, g_ref, b_ref, o_ref):
    """One (row-tile i, p1) grid step.

    x_ref: (tm, dim)         input rows (tm = tbh * W), input dtype
    w_ref: (2, dim, 2*cq)    full expand weight split by p1 (resident in VMEM)
    g_ref: (1, 2*cq)         LayerNorm gamma tiled twice (f32)
    b_ref: (1, 2*cq)         LayerNorm beta tiled twice (f32)
    o_ref: (tbh, W, 2*cq)    pre-pixel-shuffled output slab for this p1
    """
    p1 = pl.program_id(1)
    w = w_ref[p1]                                                     # (dim, 2*cq)

    # MXU matmul with f32 accumulation (bf16-native when inputs are bf16).
    y = jnp.dot(x_ref[...], w, preferred_element_type=jnp.float32)    # (tm, 2*cq) f32

    two_cq = y.shape[-1]
    cq = two_cq // 2
    inv = 1.0 / cq

    y0 = y[:, :cq]
    y1 = y[:, cq:]
    # One-pass LayerNorm statistics (sum + sum-of-squares) per cq-wide chunk.
    s0 = jnp.sum(y0, axis=-1, keepdims=True)
    q0 = jnp.sum(y0 * y0, axis=-1, keepdims=True)
    s1 = jnp.sum(y1, axis=-1, keepdims=True)
    q1 = jnp.sum(y1 * y1, axis=-1, keepdims=True)
    m0 = s0 * inv
    m1 = s1 * inv
    v0 = jnp.maximum(q0 * inv - m0 * m0, 0.0)
    v1 = jnp.maximum(q1 * inv - m1 * m1, 0.0)
    n0 = (y0 - m0) * lax.rsqrt(v0 + EPS)
    n1 = (y1 - m1) * lax.rsqrt(v1 + EPS)

    # Full-width affine then a single lane-dense store (no per-chunk sub-stores).
    out = jnp.concatenate([n0, n1], axis=-1) * g_ref[...] + b_ref[...]  # (tm, 2*cq) f32
    o_ref[...] = out.reshape(o_ref.shape).astype(o_ref.dtype)


def _row_tile(bh, w, itemsize, target_rows):
    """Pick tbh (tile over B*H) so that tm = tbh*W is sublane-aligned (or full)."""
    sub = max(8, 32 // itemsize)              # f32 -> 8, bf16 -> 16, int8 -> 32
    step = sub // math.gcd(w, sub)            # smallest tbh with (tbh*w) % sub == 0
    tbh = max(step, (max(target_rows, w) // w) // step * step)
    tbh = min(tbh, bh)
    if (tbh * w) % sub != 0:                  # cannot align within bh -> full extent
        return bh, bh                         # (block dim == array dim is always legal)
    return tbh, step


def _vmem_bytes(tm, dim, cq, in_isz, out_isz):
    return (2 * tm * dim * in_isz             # double-buffered input rows
            + 2 * 2 * dim * 2 * cq * in_isz   # resident expand weight (+ spare buffer)
            + 2 * tm * 2 * cq * out_isz       # double-buffered output slab
            + 6 * tm * 2 * cq * 4)            # f32 intermediates (y, chunks, affine)


def patch_expanding_pallas(x, w_expand_t, gamma, beta, input_resolution, *,
                           target_rows=512):
    """x: (B, L, dim); w_expand_t: (dim, 2*dim) = Linear weight transposed;
    gamma/beta: (dim//2,).  Returns (B, 4*L, dim//2)."""
    H, W = input_resolution
    B, L, dim = x.shape
    assert L == H * W, "input feature has wrong size"
    C = 2 * dim
    cq = C // 4                                # LayerNorm width (= dim // 2)
    BH = B * H
    rows = BH * W

    in_isz = jnp.dtype(x.dtype).itemsize
    out_isz = in_isz
    tbh, step = _row_tile(BH, W, in_isz, target_rows)

    # Shrink tile if it would blow a conservative VMEM budget (fits v7x 64 MiB).
    budget = 26 << 20
    while tbh > step and _vmem_bytes(tbh * W, dim, cq, in_isz, out_isz) > budget:
        new = max(step, (tbh // 2) // step * step)
        if new == tbh:
            break
        tbh = new
    tm = tbh * W
    vmem_limit = int(min(max(2 * _vmem_bytes(tm, dim, cq, in_isz, out_isz), 32 << 20),
                         64 << 20))

    x2d = x.reshape(rows, dim)
    # Split expand weight by pixel-shuffle row p1: columns [p1*2cq, (p1+1)*2cq).
    # Tiny one-time relayout (dim x 2*dim), negligible vs. activation traffic.
    w3 = w_expand_t.reshape(dim, 2, 2 * cq).transpose(1, 0, 2)        # (2, dim, 2*cq)
    g2 = jnp.concatenate([gamma, gamma]).reshape(1, 2 * cq).astype(jnp.float32)
    b2 = jnp.concatenate([beta, beta]).reshape(1, 2 * cq).astype(jnp.float32)

    grid = (pl.cdiv(BH, tbh), 2)

    out4 = pl.pallas_call(
        _expand_norm_kernel,
        out_shape=jax.ShapeDtypeStruct((BH, 2, W, 2 * cq), x.dtype),
        grid_spec=pltpu.PrefetchScalarGridSpec(
            num_scalar_prefetch=0,
            grid=grid,
            in_specs=[
                # Row tile; block index unchanged across p1 -> fetched once per i.
                pl.BlockSpec((tm, dim), lambda i, p: (i, 0)),
                # Whole weight resident in VMEM (constant block index -> one DMA).
                pl.BlockSpec((2, dim, 2 * cq), lambda i, p: (0, 0, 0)),
                pl.BlockSpec((1, 2 * cq), lambda i, p: (0, 0)),
                pl.BlockSpec((1, 2 * cq), lambda i, p: (0, 0)),
            ],
            # Output already in pixel-shuffled order: (bh, p1, w, p2*cq + c).
            out_specs=pl.BlockSpec((tbh, None, W, 2 * cq),
                                   lambda i, p: (i, p, 0, 0)),
        ),
        compiler_params=pltpu.CompilerParams(
            dimension_semantics=("parallel", "arbitrary"),
            vmem_limit_bytes=vmem_limit,
        ),
    )(x2d, w3, g2, b2)

    # (BH, p1, W, p2*cq+c) flattens exactly to (B, 2H, 2W, cq): free reshape,
    # no post-kernel transpose / extra HBM pass.
    return out4.reshape(B, 4 * L, cq)


def patch_expanding_reference(x, w_expand_t, gamma, beta, input_resolution):
    """Pure-JAX reference mirroring the PyTorch forward (f32 math)."""
    H, W = input_resolution
    B, L, dim = x.shape
    y = jnp.dot(x.astype(jnp.float32), w_expand_t.astype(jnp.float32))
    C = y.shape[-1]
    y = y.reshape(B, H, W, 2, 2, C // 4)
    y = jnp.transpose(y, (0, 1, 3, 2, 4, 5)).reshape(B, H * 2, W * 2, C // 4)
    y = y.reshape(B, -1, C // 4)
    mean = jnp.mean(y, axis=-1, keepdims=True)
    var = jnp.mean((y - mean) ** 2, axis=-1, keepdims=True)
    return (y - mean) * lax.rsqrt(var + EPS) * gamma + beta


if __name__ == "__main__":
    # Small shapes consistent with the module: dim=32, H=W=8 -> L=64, B=2.
    B, H, W, dim = 2, 8, 8, 32
    L = H * W

    key = jax.random.PRNGKey(0)
    k_x, k_w, k_g, k_b = jax.random.split(key, 4)

    x = jax.random.normal(k_x, (B, L, dim), dtype=jnp.float32)
    # nn.Linear(dim, 2*dim, bias=False) weight is (2*dim, dim); stored transposed.
    w_expand_t = jax.random.normal(k_w, (dim, 2 * dim), dtype=jnp.float32) * 0.05
    gamma = 1.0 + 0.1 * jax.random.normal(k_g, (dim // 2,), dtype=jnp.float32)
    beta = 0.1 * jax.random.normal(k_b, (dim // 2,), dtype=jnp.float32)

    # 1) f32 path: tight check against the pure-JAX reference.
    out = jax.block_until_ready(
        patch_expanding_pallas(x, w_expand_t, gamma, beta, (H, W)))
    ref = patch_expanding_reference(x, w_expand_t, gamma, beta, (H, W))
    assert out.shape == (B, 4 * L, dim // 2), out.shape
    assert jnp.allclose(out, ref, atol=1e-4, rtol=1e-4), \
        float(jnp.max(jnp.abs(out - ref)))

    # 2) bf16 fast path: MXU-native inputs, f32 LayerNorm math, bf16 output.
    xb = x.astype(jnp.bfloat16)
    wb = w_expand_t.astype(jnp.bfloat16)
    out_b = jax.block_until_ready(
        patch_expanding_pallas(xb, wb, gamma, beta, (H, W)))
    ref_b = patch_expanding_reference(xb, wb, gamma, beta, (H, W))
    assert out_b.dtype == jnp.bfloat16
    assert jnp.allclose(out_b.astype(jnp.float32), ref_b, atol=5e-2, rtol=5e-2), \
        float(jnp.max(jnp.abs(out_b.astype(jnp.float32) - ref_b)))

    # 3) Ragged grid (B*H not divisible by the row tile) exercises pl.cdiv masking.
    B2 = 3
    x2 = jax.random.normal(jax.random.PRNGKey(1), (B2, L, dim), dtype=jnp.float32)
    out2 = jax.block_until_ready(
        patch_expanding_pallas(x2, w_expand_t, gamma, beta, (H, W), target_rows=80))
    ref2 = patch_expanding_reference(x2, w_expand_t, gamma, beta, (H, W))
    assert out2.shape == (B2, 4 * L, dim // 2), out2.shape
    assert jnp.allclose(out2, ref2, atol=1e-4, rtol=1e-4), \
        float(jnp.max(jnp.abs(out2 - ref2)))

    print("KERNEL_OK")
</pallas_src>

<mosaic_0001>
module attributes {stable_mosaic.version = 11 : i64} {
  func.func @_expand_norm_kernel(%arg0: i32, %arg1: i32, %arg2: memref<128x32xf32, #tpu.memory_space<vmem>>, %arg3: memref<2x32x32xf32, #tpu.memory_space<vmem>>, %arg4: memref<1x32xf32, #tpu.memory_space<vmem>>, %arg5: memref<1x32xf32, #tpu.memory_space<vmem>>, %arg6: memref<16x1x8x32xf32, #tpu.memory_space<vmem>>) attributes {dimension_semantics = [#tpu.dimension_semantics<parallel>, #tpu.dimension_semantics<arbitrary>], iteration_bounds = array<i64: 1, 2>, scalar_prefetch = 0 : i64, scratch_operands = 0 : i64, tpu.core_type = #tpu.core_type<tc>, window_params = [{transform_indices = @transform_0, window_bounds = array<i64: 128, 32>}, {pipeline_mode = #tpu.pipeline_mode<synchronous>, transform_indices = @transform_1, window_bounds = array<i64: 2, 32, 32>}, {pipeline_mode = #tpu.pipeline_mode<synchronous>, transform_indices = @transform_2, window_bounds = array<i64: 1, 32>}, {pipeline_mode = #tpu.pipeline_mode<synchronous>, transform_indices = @transform_3, window_bounds = array<i64: 1, 32>}, {transform_indices = @transform_4, window_bounds = array<i64: 16, 1, 8, 32>}]} {
    %0 = arith.index_cast %arg1 : i32 to index
    %c0 = arith.constant 0 : index
    %c0_0 = arith.constant 0 : index
    %1 = vector.load %arg3[%0, %c0, %c0_0] : memref<2x32x32xf32, #tpu.memory_space<vmem>>, vector<1x32x32xf32>
    %2 = vector.shape_cast %1 : vector<1x32x32xf32> to vector<32x32xf32>
    %c0_1 = arith.constant 0 : index
    %c0_2 = arith.constant 0 : index
    %3 = vector.load %arg2[%c0_1, %c0_2] : memref<128x32xf32, #tpu.memory_space<vmem>>, vector<128x32xf32>
    %cst = arith.constant dense<0.000000e+00> : vector<128x32xf32>
    %4 = tpu.matmul %3, %2, %cst {dimension_numbers = #tpu.dot_dimension_numbers<[1], [0], [0], [1], [0, 0, 1, 1], [], []>} : vector<128x32xf32>, vector<32x32xf32>, vector<128x32xf32> -> vector<128x32xf32>
    %5 = vector.extract_strided_slice %4 {offsets = [0, 0], sizes = [128, 16], strides = [1, 1]} : vector<128x32xf32> to vector<128x16xf32>
    %6 = vector.extract_strided_slice %4 {offsets = [0, 16], sizes = [128, 16], strides = [1, 1]} : vector<128x32xf32> to vector<128x16xf32>
    %cst_3 = arith.constant dense<0.000000e+00> : vector<128xf32>
    %7 = vector.multi_reduction <add>, %5, %cst_3 [1] : vector<128x16xf32> to vector<128xf32>
    %8 = vector.shape_cast %7 : vector<128xf32> to vector<128x1xf32>
    %9 = arith.mulf %5, %5 : vector<128x16xf32>
    %cst_4 = arith.constant dense<0.000000e+00> : vector<128xf32>
    %10 = vector.multi_reduction <add>, %9, %cst_4 [1] : vector<128x16xf32> to vector<128xf32>
    %11 = vector.shape_cast %10 : vector<128xf32> to vector<128x1xf32>
    %cst_5 = arith.constant dense<0.000000e+00> : vector<128xf32>
    %12 = vector.multi_reduction <add>, %6, %cst_5 [1] : vector<128x16xf32> to vector<128xf32>
    %13 = vector.shape_cast %12 : vector<128xf32> to vector<128x1xf32>
    %14 = arith.mulf %6, %6 : vector<128x16xf32>
    %cst_6 = arith.constant dense<0.000000e+00> : vector<128xf32>
    %15 = vector.multi_reduction <add>, %14, %cst_6 [1] : vector<128x16xf32> to vector<128xf32>
    %16 = vector.shape_cast %15 : vector<128xf32> to vector<128x1xf32>
    %cst_7 = arith.constant 6.250000e-02 : f32
    %17 = vector.broadcast %cst_7 : f32 to vector<128x1xf32>
    %18 = arith.mulf %8, %17 : vector<128x1xf32>
    %cst_8 = arith.constant 6.250000e-02 : f32
    %19 = vector.broadcast %cst_8 : f32 to vector<128x1xf32>
    %20 = arith.mulf %13, %19 : vector<128x1xf32>
    %cst_9 = arith.constant 6.250000e-02 : f32
    %21 = vector.broadcast %cst_9 : f32 to vector<128x1xf32>
    %22 = arith.mulf %11, %21 : vector<128x1xf32>
    %23 = arith.mulf %18, %18 : vector<128x1xf32>
    %24 = arith.subf %22, %23 : vector<128x1xf32>
    %cst_10 = arith.constant 0.000000e+00 : f32
    %25 = vector.broadcast %cst_10 : f32 to vector<128x1xf32>
    %26 = arith.maximumf %24, %25 : vector<128x1xf32>
    %cst_11 = arith.constant 6.250000e-02 : f32
    %27 = vector.broadcast %cst_11 : f32 to vector<128x1xf32>
    %28 = arith.mulf %16, %27 : vector<128x1xf32>
    %29 = arith.mulf %20, %20 : vector<128x1xf32>
    %30 = arith.subf %28, %29 : vector<128x1xf32>
    %cst_12 = arith.constant 0.000000e+00 : f32
    %31 = vector.broadcast %cst_12 : f32 to vector<128x1xf32>
    %32 = arith.maximumf %30, %31 : vector<128x1xf32>
    %33 = vector.broadcast %18 : vector<128x1xf32> to vector<128x16xf32>
    %34 = arith.subf %5, %33 : vector<128x16xf32>
    %cst_13 = arith.constant 9.99999974E-6 : f32
    %35 = vector.broadcast %cst_13 : f32 to vector<128x1xf32>
    %36 = arith.addf %26, %35 : vector<128x1xf32>
    %37 = math.rsqrt %36 : vector<128x1xf32>
    %38 = vector.broadcast %37 : vector<128x1xf32> to vector<128x16xf32>
    %39 = arith.mulf %34, %38 : vector<128x16xf32>
    %40 = vector.broadcast %20 : vector<128x1xf32> to vector<128x16xf32>
    %41 = arith.subf %6, %40 : vector<128x16xf32>
    %cst_14 = arith.constant 9.99999974E-6 : f32
    %42 = vector.broadcast %cst_14 : f32 to vector<128x1xf32>
    %43 = arith.addf %32, %42 : vector<128x1xf32>
    %44 = math.rsqrt %43 : vector<128x1xf32>
    %45 = vector.broadcast %44 : vector<128x1xf32> to vector<128x16xf32>
    %46 = arith.mulf %41, %45 : vector<128x16xf32>
    %47 = tpu.concatenate %39, %46 in 1 : vector<128x16xf32>, vector<128x16xf32> -> vector<128x32xf32>
    %c0_15 = arith.constant 0 : index
    %c0_16 = arith.constant 0 : index
    %48 = vector.load %arg4[%c0_15, %c0_16] : memref<1x32xf32, #tpu.memory_space<vmem>>, vector<1x32xf32>
    %49 = vector.broadcast %48 : vector<1x32xf32> to vector<128x32xf32>
    %50 = arith.mulf %47, %49 : vector<128x32xf32>
    %c0_17 = arith.constant 0 : index
    %c0_18 = arith.constant 0 : index
    %51 = vector.load %arg5[%c0_17, %c0_18] : memref<1x32xf32, #tpu.memory_space<vmem>>, vector<1x32xf32>
    %52 = vector.broadcast %51 : vector<1x32xf32> to vector<128x32xf32>
    %53 = arith.addf %50, %52 : vector<128x32xf32>
    %54 = vector.shape_cast %53 : vector<128x32xf32> to vector<16x8x32xf32>
    %c0_19 = arith.constant 0 : index
    %c0_20 = arith.constant 0 : index
    %c0_21 = arith.constant 0 : index
    %c0_22 = arith.constant 0 : index
    %55 = vector.load %arg6[%c0_19, %c0_20, %c0_21, %c0_22] : memref<16x1x8x32xf32, #tpu.memory_space<vmem>>, vector<16x1x8x32xf32>
    %56 = vector.shape_cast %55 : vector<16x1x8x32xf32> to vector<16x8x32xf32>
    %57 = vector.shape_cast %54 : vector<16x8x32xf32> to vector<16x1x8x32xf32>
    tpu.vector_store %arg6[%c0_19, %c0_20, %c0_21, %c0_22], %57 {strides = array<i32>} : memref<16x1x8x32xf32, #tpu.memory_space<vmem>>, vector<16x1x8x32xf32>,
    return
  }
  func.func @transform_0(%arg0: i32, %arg1: i32) -> (i32, i32) {
    %c0_i32 = arith.constant 0 : i32
    %c0_i32_0 = arith.constant 0 : i32
    return %arg0, %c0_i32 : i32, i32
  }
  func.func @transform_1(%arg0: i32, %arg1: i32) -> (i32, i32, i32) {
    %c0_i32 = arith.constant 0 : i32
    %c0_i32_0 = arith.constant 0 : i32
    %c0_i32_1 = arith.constant 0 : i32
    %c0_i32_2 = arith.constant 0 : i32
    return %c0_i32, %c0_i32_0, %c0_i32_1 : i32, i32, i32
  }
  func.func @transform_2(%arg0: i32, %arg1: i32) -> (i32, i32) {
    %c0_i32 = arith.constant 0 : i32
    %c0_i32_0 = arith.constant 0 : i32
    %c0_i32_1 = arith.constant 0 : i32
    return %c0_i32, %c0_i32_0 : i32, i32
  }
  func.func @transform_3(%arg0: i32, %arg1: i32) -> (i32, i32) {
    %c0_i32 = arith.constant 0 : i32
    %c0_i32_0 = arith.constant 0 : i32
    %c0_i32_1 = arith.constant 0 : i32
    return %c0_i32, %c0_i32_0 : i32, i32
  }
  func.func @transform_4(%arg0: i32, %arg1: i32) -> (i32, i32, i32, i32) {
    %c0_i32 = arith.constant 0 : i32
    %c0_i32_0 = arith.constant 0 : i32
    %c0_i32_1 = arith.constant 0 : i32
    return %arg0, %arg1, %c0_i32, %c0_i32_0 : i32, i32, i32, i32
  }
}

</mosaic_0001>

<bundles_post_ra>
// kernel: tpu_custom_call.1
= control target key start
LH: loop header
LB: loop body
LE: loop exit
PB: predicated region body
PF: predicated region fallthrough
CT: control target
= control target key end

     0   :  { %9 = vsyncpa [#allocation3], 0  ;;  %s2267_s0 = inlined_call_operand.vmem [shape: f32[128,32], index: 0, kind: input, shape index: {}]   ;;  %s2268_s1 = inlined_call_operand.vmem [shape: f32[2,32,32], index: 1, kind: input, shape index: {}]   ;;  %s2269_s2 = inlined_call_operand.vmem [shape: f32[1,32], index: 2, kind: input, shape index: {}]   ;;  %s2270_s3 = inlined_call_operand.vmem [shape: f32[1,32], index: 3, kind: input, shape index: {}]   ;;  %s2271_s4 = inlined_call_operand.hbm [shape: f32[16,2,8,32], index: 4, kind: output, shape index: {}]  }
   0x1   :  { %11 = vsyncpa [#allocation3 + $0x1], 0  ;;  %s1551_s15 = smov 0   ;;  %s1553_s16 = smov 0  }
   0x2   :  { %s1555_s17 = smov 0   ;;  %s1557_s18 = smov 0  }
   0x3   :  { %s1559_s19 = smov 0   ;;  %s1561_s20 = smov 0  }
   0x4 LB: > { %s1225_s21 = sadd.s32 4294967295, %s1519_s20   ;;  %s1226_s22 = sadd.s32 4294967294, %s1519_s20   ;;  %s1519_s20 = sphi %s1561_s20, %s17_s20   ;;  %s1515_s19 = sphi %s1559_s19, %s2279_s19   ;;  %s1511_s18 = sphi %s1557_s18, %s2278_s18   ;;  %s1507_s17 = sphi %s1555_s17, %s2277_s17   ;;  %s1503_s16 = sphi %s1553_s16, %s2276_s16   ;;  %s1499_s15 = sphi %s1551_s15, %s2275_s15  }
   0x5   : > { %s26_s23 = sadd.s32 1, %s1515_s19  ;;  %s127_s24 = sadd.s32 1, %s1507_s17 }
   0x6   : > { %p27_p0 = scmp.ge.s32.totalorder %s26_s23, 2  ;;  %p137_p1 = scmp.ne.s32.totalorder %s1507_s17, %s1503_s16 }
   0x7   : > { %p138_p2 = scmp.eq.s32.totalorder %s1225_s21, 1  ;;  %p143_p3 = scmp.ne.s32.totalorder %s1503_s16, %s1499_s15 }
   0x8   : > { %s2281_s23 = smov (%p27_p0, %s26_s23), 0  ;;  %p144_p5 = scmp.eq.s32.totalorder %s1226_s22, 1 }
   0x9   : > { %p1591_p4 = por %p138_p2, %p137_p1  ;;  %s123_s26 = ssub.s32 %s1515_s19, %s2281_s23 }
   0xa   : > { %p1229_p6 = scmp.ge.s32.totalorder %s1519_s20, 1  ;;  %p125_p7 = scmp.eq.s32.totalorder %s123_s26, 0 }
   0xb   : > { %p1598_p8 = por %p144_p5, %p143_p3  ;;  %p180_p9 = scmp.lt.s32.totalorder %s1519_s20, 3 }
   0xc   : > { %s1604_s28 = scalar_select %p125_p7, %s1507_s17, %s127_s24  }
   0xd   : > { %p181_p10 = pnand %p1229_p6, %p180_p9 }
   0xe   : > { %s1231_s29 = sshll.u32 (!%p181_p10), %s1511_s18, 5  ;;  %v219_v0 = vld [vmem:[%s2267_s0] sm:$0xff] (!%p181_p10)  ;;  %vm235_vm0 = vcmask (!%p181_p10), 261120   ;;  %v220_v8 = vld [vmem:[%s2267_s0 + $0x8] sm:$0xff] (!%p181_p10)  ;;  %v221_v10 = vld [vmem:[%s2267_s0 + $0x10] sm:$0xff] (!%p181_p10)  ;;  %vm429_vm1 = vcmask (!%p181_p10), 130048  }
   0xf   : > { %184 = sbr.rel (%p181_p10) target bundleno = 1033 (0x409), region = 36  ;;  %v227_v1 = vld [vmem:[%s2267_s0 + $0x40] sm:$0xff] (!%p181_p10)  ;;  %s214_s10 = scalar_lea.vmem (!%p181_p10), %s2268_s1, %s1231_s29  ;;  %1282 = vmatprep.mubr.msk.f32.mxu0 (!%p181_p10), %vm235_vm0, %v219_v0  ;;  %v228_v9 = vld [vmem:[%s2267_s0 + $0x48] sm:$0xff] (!%p181_p10)  ;;  %v229_v11 = vld [vmem:[%s2267_s0 + $0x50] sm:$0xff] (!%p181_p10) }
  0x10   : > { %1294 = vmatprep.mubr.msk.f32.mxu1 (!%p181_p10), %vm235_vm0, %v227_v1  ;;  %v215_v2 = vld [vmem:[%s214_s10] sm:$0xff] (!%p181_p10)  ;;  %v216_v3 = vld [vmem:[%s214_s10 + $0x8] sm:$0xff] (!%p181_p10)  ;;  %v217_v4 = vld [vmem:[%s214_s10 + $0x10] sm:$0xff] (!%p181_p10)  ;;  %s1521_s21 = smov (!%p181_p10), 112   ;;  %s203_s8 = sand.u32 (!%p181_p10), 1, %s1503_s16  }
  0x11   : > { %v1306_v5 = vpack.c.bf16 (!%p181_p10), %v216_v3, %v215_v2  ;;  %v218_v6 = vld [vmem:[%s214_s10 + $0x18] sm:$0xff] (!%p181_p10)  ;;  %v223_v14 = vld [vmem:[%s2267_s0 + $0x20] sm:$0xff] (!%p181_p10)  ;;  %v224_v15 = vld [vmem:[%s2267_s0 + $0x28] sm:$0xff] (!%p181_p10)  ;;  %s1230_s11 = sshll.u32 (!%p181_p10), %s203_s8, 7  ;;  %s1522_s5 = smov (!%p181_p10), [#allocation2]  }
  0x12   : > { %v1310_v7 = vpack.c.bf16 (!%p181_p10), %v218_v6, %v217_v4  ;;  %v222_v12 = vld [vmem:[%s2267_s0 + $0x18] sm:$0xff] (!%p181_p10)  ;;  %v231_v16 = vld [vmem:[%s2267_s0 + $0x60] sm:$0xff] (!%p181_p10)  ;;  %v232_v17 = vld [vmem:[%s2267_s0 + $0x68] sm:$0xff] (!%p181_p10)  ;;  %s2059_s14 = scalar_lea.vmem (!%p181_p10), [#allocation2], %s1230_s11  ;;  %s1445_s6 = sshll.u32 (!%p181_p10), %s1522_s5, 4  ;;  %s1446_s6 = int_to_ptr.vmem [resolvable:$false] %s1445_s6 }
  0x13   : > { %1307 = vmatprep.subr.bf16.mxu0 (!%p181_p10), %v1306_v5  ;;  %1314 = vmatprep.subr.bf16.mxu1 (!%p181_p10), %v1306_v5  ;;  %v230_v13 = vld [vmem:[%s2267_s0 + $0x58] sm:$0xff] (!%p181_p10)  ;;  %v225_v27 = vld [vmem:[%s2267_s0 + $0x30] sm:$0xff] (!%p181_p10)  ;;  %s1148_s22 = sshll.u32 (!%p181_p10), %s2059_s14, 4  ;;  %s1447_s7 = scalar_lea.vmem (!%p181_p10), %s1446_s6, 4096  ;;  %s2214_s22 = int_to_ptr.vmem [resolvable:$true] %s1148_s22 }
  0x14   : > { %1309 = vmatpush3.bf16.msra.mxu0 (!%p181_p10), %v1306_v5  ;;  %1316 = vmatpush3.bf16.msra.mxu1 (!%p181_p10), %v1306_v5  ;;  %v226_v28 = vld [vmem:[%s2267_s0 + $0x38] sm:$0xff] (!%p181_p10)  ;;  %v233_v29 = vld [vmem:[%s2267_s0 + $0x70] sm:$0xff] (!%p181_p10)  ;;  %s1441_s30 = scalar_lea.vmem (!%p181_p10), %s2214_s22, 2048  ;;  %p1448_p0 = scmp.lt.s32.totalorder (!%p181_p10), %s2214_s22, %s1446_s6 }
  0x15   : > { %1311 = vmatprep.subr.bf16.mxu0 (!%p181_p10), %v1310_v7  ;;  %1315 = vmatprep.subr.bf16.mxu1 (!%p181_p10), %v1310_v7  ;;  %v234_v30 = vld [vmem:[%s2267_s0 + $0x78] sm:$0xff] (!%p181_p10)  ;;  %p1442_p11 = scmp.ne.s32.totalorder (!%p181_p10), %s2214_s22, %s1441_s30  ;;  %p1449_p1 = scmp.lt.s32.totalorder (!%p181_p10), %s1447_s7, %s1441_s30 }
  0x17   : > { %p1443_p12 = pnand %p1442_p11, %p1591_p4  ;;  %p1450_p2 = por %p1449_p1, %p1448_p0 }
  0x18   : > { %1313 = vmatpush3.bf16.msra.mxu0 %v1310_v7  ;;  %1317 = vmatpush3.bf16.msra.mxu1 %v1310_v7 }
  0x19   : > { %p1444_p13 = pneg %p1443_p12 }
  0x1b   : > { %1283 = vmatmul.mubr.msk.f32.vlgmr.msra.gmra.mrb[0].mxu0 %vm235_vm0, %v220_v8  ;;  %1295 = vmatmul.mubr.msk.f32.vlgmr.msra.gmra.mrb[0].mxu1 %vm235_vm0, %v228_v9  ;;  %p1451_p3 = pnand %p1450_p2, %p1444_p13 }
  0x1c   : > { %1285 = vmatprep.mubr.msk.f32.mxu0 %vm235_vm0, %v221_v10  ;;  %1297 = vmatprep.mubr.msk.f32.mxu1 %vm235_vm0, %v229_v11 }
  0x1f   : > { %1286 = vmatmul.mubr.msk.f32.gmra.mrb[2].mxu0 %vm235_vm0, %v222_v12  ;;  %1298 = vmatmul.mubr.msk.f32.gmra.mrb[2].mxu1 %vm235_vm0, %v230_v13 }
  0x20   : > { %1288 = vmatprep.mubr.msk.f32.mxu0 %vm235_vm0, %v223_v14  ;;  %1300 = vmatprep.mubr.msk.f32.mxu1 %vm235_vm0, %v231_v16 }
  0x23   : > { %1289 = vmatmul.mubr.msk.f32.gmra.mrb[4].mxu0 %vm235_vm0, %v224_v15  ;;  %1301 = vmatmul.mubr.msk.f32.gmra.mrb[4].mxu1 %vm235_vm0, %v232_v17 }
  0x24   : > { %1291 = vmatprep.mubr.msk.f32.mxu0 %vm235_vm0, %v225_v27  ;;  %1303 = vmatprep.mubr.msk.f32.mxu1 %vm235_vm0, %v233_v29 }
  0x27   : > { %1292 = vmatmul.mubr.msk.f32.gmra.mrb[6].mxu0 %vm235_vm0, %v226_v28  ;;  %1304 = vmatmul.mubr.msk.f32.gmra.mrb[6].mxu1 %vm235_vm0, %v234_v30 }
  0xee   : > { %v1658_v18 = vpop.f32.mrb[0].mxu0  ;;  %v1660_v19 = vpop.f32.mrb[0].mxu1 }
  0xef   : > { %560 = vrot.lane.b32.xlu1 %v1658_v18, %s1521_s21  ;;  %v1664_v20 = vpop.f32.mrb[1].mxu0  ;;  %v433_v21 = vsel %vm429_vm1, %v1658_v18, 0.0  ;;  %v1668_v22 = vpop.f32.mrb[1].mxu1  ;;  %v457_v31 = vsel %vm429_vm1, %v1660_v19, 0.0  ;;  %v479_v32 = vmul.f32 %v1658_v18, %v1658_v18  ;;  %v487_v34 = vmul.f32 %v1660_v19, %v1660_v19 }
  0xf0   : > { %434 = vadd.xlane.f32.xlu0 %v433_v21  ;;  %v430_v33 = vsel %vm429_vm1, %v1664_v20, 0.0  ;;  %v454_v35 = vsel %vm429_vm1, %v1668_v22, 0.0  ;;  %v478_v36 = vmul.f32 %v1664_v20, %v1664_v20  ;;  %v486_v37 = vmul.f32 %v1668_v22, %v1668_v22 }
  0xf1   : > { %v497_v38 = vsel %vm429_vm1, %v479_v32, 0.0  ;;  %v521_v39 = vsel %vm429_vm1, %v487_v34, 0.0 }
  0xf2   : > { %v1670_v23 = vpop.f32.mrb[2].mxu0  ;;  %v1672_v24 = vpop.f32.mrb[2].mxu1  ;;  %v494_v40 = vsel %vm429_vm1, %v478_v36, 0.0  ;;  %v518_v41 = vsel %vm429_vm1, %v486_v37, 0.0 }
  0xf3   : > { %576 = vrot.lane.b32.xlu1 %v1660_v19, %s1521_s21  ;;  %v1676_v25 = vpop.f32.mrb[3].mxu0  ;;  %v1678_v26 = vpop.f32.mrb[3].mxu1  ;;  %v439_v49 = vsel %vm429_vm1, %v1670_v23, 0.0  ;;  %v463_v50 = vsel %vm429_vm1, %v1672_v24, 0.0  ;;  %v481_v5 = vmul.f32 %v1670_v23, %v1670_v23  ;;  %v489_v8 = vmul.f32 %v1672_v24, %v1672_v24 }
  0xf4   : > { %v460_v52 = vsel %vm429_vm1, %v1678_v26, 0.0  ;;  %v480_v59 = vmul.f32 %v1676_v25, %v1676_v25  ;;  %v488_v62 = vmul.f32 %v1678_v26, %v1678_v26  ;;  %v436_v3 = vsel %vm429_vm1, %v1676_v25, 0.0 }
  0xf6   : > { %v1726_v42 = vpop.f32.mrb[4].mxu0  ;;  %v1730_v44 = vpop.f32.mrb[4].mxu1  ;;  %v500_v6 = vsel %vm429_vm1, %v480_v59, 0.0  ;;  %v524_v9 = vsel %vm429_vm1, %v488_v62, 0.0 }
  0xf7   : > { %v1728_v43 = vpop.f32.mrb[5].mxu0  ;;  %v1732_v45 = vpop.f32.mrb[5].mxu1 }
 0x106   : > { %558 = vrot.lane.b32.xlu0 %v1664_v20, %s1521_s21 }
 0x10a   : > { %574 = vrot.lane.b32.xlu0 %v1668_v22, %s1521_s21 }
 0x117   : > { %458 = vadd.xlane.f32.xlu1 %v457_v31  ;;  %v1781_v31 = vpop.f32.mrb[6].mxu0 }
 0x128   : > { %672 = vrot.lane.b32.xlu1 %v479_v32, %s1521_s21  ;;  %v1783_v32 = vpop.f32.mrb[7].mxu0 }
 0x129   : > { %431 = vadd.xlane.f32.xlu0 %v430_v33  ;;  %v1785_v33 = vpop.f32.mrb[6].mxu1 }
 0x12c   : > { %688 = vrot.lane.b32.xlu1 %v487_v34, %s1521_s21 }
 0x12d   : > { %455 = vadd.xlane.f32.xlu0 %v454_v35  ;;  %v1789_v35 = vpop.f32.mrb[7].mxu1 }
 0x143   : > { %670 = vrot.lane.b32.xlu0 %v478_v36, %s1521_s21 }
 0x147   : > { %686 = vrot.lane.b32.xlu0 %v486_v37, %s1521_s21 }
 0x150   : > { %498 = vadd.xlane.f32.xlu1 %v497_v38 }
 0x154   : > { %522 = vadd.xlane.f32.xlu1 %v521_v39 }
 0x161   : > { %v1741_v51 = vpop.permute.xlu1 %560 }
 0x165   : > { %564 = vrot.lane.b32.xlu1 %v1670_v23, %s1521_s21  ;;  %v1745_v53 = vpop.permute.xlu1 %576 }
 0x166   : > { %495 = vadd.xlane.f32.xlu0 %v494_v40 }
 0x169   : > { %580 = vrot.lane.b32.xlu1 %v1672_v24, %s1521_s21 }
 0x16a   : > { %519 = vadd.xlane.f32.xlu0 %v518_v41 }
 0x17d   : > { %v435_v46 = vpop.xlane.xlu0 %434 }
 0x17e   : > { %v767_v47 = vmul.f32 0.0625, %v435_v46 }
 0x180   : > { %v927_v48 = vsub.f32 %v1658_v18, %v767_v47  ;;  %578 = vrot.lane.b32.xlu0 %v1678_v26, %s1521_s21  ;;  %v815_v11 = vmul.f32 %v767_v47, %v767_v47 }
 0x181   : > { %v1750_v57 = vpop.permute.xlu0 %558 }
 0x185   : > { %v1752_v58 = vpop.permute.xlu0 %574 }
 0x18d   : > { %440 = vadd.xlane.f32.xlu1 %v439_v49 }
 0x191   : > { %464 = vadd.xlane.f32.xlu1 %v463_v50 }
 0x19f   : > { %461 = vadd.xlane.f32.xlu0 %v460_v52 }
 0x1a2   : > { %562 = vrot.lane.b32.xlu1 %v1676_v25, %s1521_s21 }
 0x1a4   : > { %v459_v54 = vpop.xlane.xlu1 %458 }
 0x1a5   : > { %v775_v55 = vmul.f32 0.0625, %v459_v54 }
 0x1a7   : > { %v935_v56 = vsub.f32 %v1660_v19, %v775_v55  ;;  %v823_v15 = vmul.f32 %v775_v55, %v775_v55 }
 0x1a8   : > { %v1767_v4 = vpop.permute.xlu1 %672 }
 0x1ac   : > { %v1773_v7 = vpop.permute.xlu1 %688 }
 0x1b5   : > { %674 = vrot.lane.b32.xlu0 %v480_v59, %s1521_s21 }
 0x1b6   : > { %v432_v60 = vpop.xlane.xlu0 %431 }
 0x1b7   : > { %v1757_v61 = vmul.f32 0.0625, %v432_v60 }
 0x1b9   : > { %v926_v63 = vsub.f32 %v1664_v20, %v1757_v61  ;;  %690 = vrot.lane.b32.xlu0 %v488_v62, %s1521_s21  ;;  %v814_v40 = vmul.f32 %v1757_v61, %v1757_v61  ;;  %v503_v62 = vsel %vm429_vm1, %v481_v5, 0.0 }
 0x1ba   : > { %v456_v0 = vpop.xlane.xlu0 %455 }
 0x1bb   : > { %v774_v1 = vmul.f32 0.0625, %v456_v0 }
 0x1bd   : > { %v934_v2 = vsub.f32 %v1668_v22, %v774_v1  ;;  %v822_v50 = vmul.f32 %v774_v1, %v774_v1 }
 0x1be   : > { %v1779_v30 = vpop.permute.xlu0 %670 }
 0x1c2   : > { %v1787_v34 = vpop.permute.xlu0 %686 }
 0x1c6   : > { %437 = vadd.xlane.f32.xlu1 %v436_v3 }
 0x1d7   : > { %676 = vrot.lane.b32.xlu1 %v481_v5, %s1521_s21 }
 0x1d8   : > { %501 = vadd.xlane.f32.xlu0 %v500_v6 }
 0x1db   : > { %692 = vrot.lane.b32.xlu1 %v489_v8, %s1521_s21 }
 0x1dc   : > { %525 = vadd.xlane.f32.xlu0 %v524_v9  ;;  %v442_v9 = vsel %vm429_vm1, %v1728_v43, 0.0 }
 0x1dd   : > { %v499_v10 = vpop.xlane.xlu1 %498 }
 0x1de   : > { %v799_v12 = vmul.f32 0.0625, %v499_v10 }
 0x1e0   : > { %v831_v13 = vsub.f32 %v799_v12, %v815_v11 }
 0x1e1   : > { %v523_v14 = vpop.xlane.xlu1 %522 }
 0x1e2   : > { %v847_v16 = vmax.f32 %v831_v13, 0.0  ;;  %v807_v17 = vmul.f32 0.0625, %v523_v14 }
 0x1e4   : > { %v943_v21 = vadd.f32 1e-05, %v847_v16  ;;  %v839_v27 = vsub.f32 %v807_v17, %v823_v15  ;;  %v482_v17 = vmul.f32 %v1728_v43, %v1728_v43 }
 0x1e5   : > { %v1807_v1 = vpop.permute.xlu1 %564 }
 0x1e6   : > { %1377 = vrsqrt.f32 %v943_v21  ;;  %v855_v28 = vmax.f32 %v839_v27, 0.0  ;;  %v490_v27 = vmul.f32 %v1732_v45, %v1732_v45 }
 0x1e8   : > { %v951_v29 = vadd.f32 1e-05, %v855_v28  ;;  %v445_v28 = vsel %vm429_vm1, %v1726_v42, 0.0 }
 0x1e9   : > { %v1813_v5 = vpop.permute.xlu1 %580 }
 0x1ea   : > { %1379 = vrsqrt.f32 %v951_v29  ;;  %v469_v29 = vsel %vm429_vm1, %v1730_v44, 0.0 }
 0x1f0   : > { %v1378_v36 = vpop.eup %1377 }
 0x1f1   : > { %v1791_v37 = vmul.f32 %v1378_v36, %v927_v48 }
 0x1f2   : > { %566 = vrot.lane.b32.xlu0 %v1728_v43, %s1521_s21 }
 0x1f3   : > { %v496_v38 = vpop.xlane.xlu0 %495 }
 0x1f4   : > { %v1380_v39 = vpop.eup %1379  ;;  %v798_v41 = vmul.f32 0.0625, %v496_v38  ;;  %v483_v38 = vmul.f32 %v1726_v42, %v1726_v42 }
 0x1f5   : > { %v1797_v46 = vmul.f32 %v1380_v39, %v935_v56  ;;  %v527_v56 = vsel %vm429_vm1, %v489_v8, 0.0  ;;  %v466_v8 = vsel %vm429_vm1, %v1732_v45, 0.0  ;;  %v506_v39 = vsel %vm429_vm1, %v482_v17, 0.0 }
 0x1f6   : > { %v830_v47 = vsub.f32 %v798_v41, %v814_v40  ;;  %582 = vrot.lane.b32.xlu0 %v1732_v45, %s1521_s21  ;;  %v491_v41 = vmul.f32 %v1730_v44, %v1730_v44 }
 0x1f7   : > { %v520_v49 = vpop.xlane.xlu0 %519 }
 0x1f8   : > { %v846_v52 = vmax.f32 %v830_v47, 0.0  ;;  %v806_v48 = vmul.f32 0.0625, %v520_v49  ;;  %v530_v49 = vsel %vm429_vm1, %v490_v27, 0.0 }
 0x1fa   : > { %v942_v54 = vadd.f32 1e-05, %v846_v52  ;;  %v838_v55 = vsub.f32 %v806_v48, %v822_v50 }
 0x1fb   : > { %v1827_v14 = vpop.permute.xlu0 %578 }
 0x1fc   : > { %1381 = vrsqrt.f32 %v942_v54  ;;  %v854_v59 = vmax.f32 %v838_v55, 0.0 }
 0x1fe   : > { %v950_v60 = vadd.f32 1e-05, %v854_v59 }
 0x1ff   : > { %504 = vadd.xlane.f32.xlu1 %v503_v62 }
 0x200   : > { %1383 = vrsqrt.f32 %v950_v60 }
 0x203   : > { %528 = vadd.xlane.f32.xlu1 %v527_v56 }
 0x206   : > { %v1382_v61 = vpop.eup %1381 }
 0x207   : > { %v1803_v0 = vmul.f32 %v1382_v61, %v926_v63 }
 0x20a   : > { %v1384_v3 = vpop.eup %1383 }
 0x20b   : > { %v1805_v6 = vmul.f32 %v1384_v3, %v934_v2 }
 0x214   : > { %568 = vrot.lane.b32.xlu1 %v1726_v42, %s1521_s21 }
 0x215   : > { %443 = vadd.xlane.f32.xlu0 %v442_v9 }
 0x218   : > { %584 = vrot.lane.b32.xlu1 %v1730_v44, %s1521_s21 }
 0x219   : > { %467 = vadd.xlane.f32.xlu0 %v466_v8 }
 0x21a   : > { %v441_v63 = vpop.xlane.xlu1 %440 }
 0x21b   : > { %v1819_v2 = vmul.f32 0.0625, %v441_v63 }
 0x21d   : > { %v929_v10 = vsub.f32 %v1670_v23, %v1819_v2 }
 0x21e   : > { %v465_v11 = vpop.xlane.xlu1 %464 }
 0x21f   : > { %v1823_v12 = vmul.f32 0.0625, %v465_v11 }
 0x221   : > { %v937_v13 = vsub.f32 %v1672_v24, %v1823_v12 }
 0x222   : > { %v1840_v36 = vpop.permute.xlu1 %562 }
 0x22c   : > { %v462_v15 = vpop.xlane.xlu0 %461 }
 0x22d   : > { %v776_v16 = vmul.f32 0.0625, %v462_v15 }
 0x22f   : > { %v936_v21 = vsub.f32 %v1678_v26, %v776_v16  ;;  %678 = vrot.lane.b32.xlu0 %v482_v17, %s1521_s21  ;;  %v824_v56 = vmul.f32 %v776_v16, %v776_v16  ;;  %v509_v17 = vsel %vm429_vm1, %v483_v38, 0.0 }
 0x230   : > { %v1851_v52 = vpop.permute.xlu0 %674 }
 0x233   : > { %694 = vrot.lane.b32.xlu0 %v490_v27, %s1521_s21 }
 0x234   : > { %v1853_v48 = vpop.permute.xlu0 %690 }
 0x23c   : > { %446 = vadd.xlane.f32.xlu1 %v445_v28  ;;  %v533_v28 = vsel %vm429_vm1, %v491_v41, 0.0 }
 0x240   : > { %470 = vadd.xlane.f32.xlu1 %v469_v29 }
 0x251   : > { %680 = vrot.lane.b32.xlu1 %v483_v38, %s1521_s21  ;;  %v817_v38 = vmul.f32 %v1819_v2, %v1819_v2  ;;  %v484_v2 = vmul.f32 %v1783_v32, %v1783_v32 }
 0x252   : > { %507 = vadd.xlane.f32.xlu0 %v506_v39 }
 0x253   : > { %v438_v40 = vpop.xlane.xlu1 %437 }
 0x254   : > { %v768_v47 = vmul.f32 0.0625, %v438_v40 }
 0x255   : > { %696 = vrot.lane.b32.xlu1 %v491_v41, %s1521_s21  ;;  %v472_v41 = vsel %vm429_vm1, %v1789_v35, 0.0 }
 0x256   : > { %v928_v50 = vsub.f32 %v1676_v25, %v768_v47  ;;  %531 = vadd.xlane.f32.xlu0 %v530_v49  ;;  %v816_v55 = vmul.f32 %v768_v47, %v768_v47  ;;  %v448_v49 = vsel %vm429_vm1, %v1783_v32, 0.0 }
 0x257   : > { %v1865_v39 = vpop.permute.xlu1 %676 }
 0x25b   : > { %v1867_v40 = vpop.permute.xlu1 %692 }
 0x265   : > { %v502_v54 = vpop.xlane.xlu0 %501 }
 0x266   : > { %v800_v59 = vmul.f32 0.0625, %v502_v54 }
 0x268   : > { %v832_v60 = vsub.f32 %v800_v59, %v816_v55  ;;  %v825_v55 = vmul.f32 %v1823_v12, %v1823_v12  ;;  %v451_v12 = vsel %vm429_vm1, %v1781_v31, 0.0 }
 0x269   : > { %v526_v62 = vpop.xlane.xlu0 %525 }
 0x26a   : > { %v848_v61 = vmax.f32 %v832_v60, 0.0  ;;  %v808_v3 = vmul.f32 0.0625, %v526_v62 }
 0x26c   : > { %v944_v9 = vadd.f32 1e-05, %v848_v61  ;;  %v840_v8 = vsub.f32 %v808_v3, %v824_v56  ;;  %570 = vrot.lane.b32.xlu0 %v1783_v32, %s1521_s21 }
 0x26e   : > { %1385 = vrsqrt.f32 %v944_v9  ;;  %v856_v63 = vmax.f32 %v840_v8, 0.0  ;;  %v1881_v9 = vpop.permute.xlu0 %566 }
 0x270   : > { %v952_v11 = vadd.f32 1e-05, %v856_v63  ;;  %586 = vrot.lane.b32.xlu0 %v1789_v35, %s1521_s21 }
 0x272   : > { %1387 = vrsqrt.f32 %v952_v11  ;;  %v1883_v8 = vpop.permute.xlu0 %582 }
 0x278   : > { %v1386_v15 = vpop.eup %1385 }
 0x279   : > { %v1860_v27 = vmul.f32 %v1386_v15, %v928_v50  ;;  %510 = vadd.xlane.f32.xlu1 %v509_v17 }
 0x27c   : > { %v1388_v16 = vpop.eup %1387 }
 0x27d   : > { %v1863_v29 = vmul.f32 %v1388_v16, %v936_v21  ;;  %534 = vadd.xlane.f32.xlu1 %v533_v28 }
 0x28c   : > { %v505_v47 = vpop.xlane.xlu1 %504 }
 0x28d   : > { %v801_v50 = vmul.f32 0.0625, %v505_v47 }
 0x28e   : > { %572 = vrot.lane.b32.xlu1 %v1781_v31, %s1521_s21 }
 0x28f   : > { %v833_v54 = vsub.f32 %v801_v50, %v817_v38  ;;  %449 = vadd.xlane.f32.xlu0 %v448_v49  ;;  %v492_v50 = vmul.f32 %v1789_v35, %v1789_v35 }
 0x290   : > { %v529_v21 = vpop.xlane.xlu1 %528 }
 0x291   : > { %v849_v59 = vmax.f32 %v833_v54, 0.0  ;;  %v809_v60 = vmul.f32 0.0625, %v529_v21 }
 0x292   : > { %588 = vrot.lane.b32.xlu1 %v1785_v33, %s1521_s21 }
 0x293   : > { %v945_v62 = vadd.f32 1e-05, %v849_v59  ;;  %v841_v56 = vsub.f32 %v809_v60, %v825_v55  ;;  %473 = vadd.xlane.f32.xlu0 %v472_v41  ;;  %v485_v55 = vmul.f32 %v1781_v31, %v1781_v31  ;;  %v512_v60 = vsel %vm429_vm1, %v484_v2, 0.0 }
 0x294   : > { %v1913_v54 = vpop.permute.xlu1 %568 }
 0x295   : > { %1389 = vrsqrt.f32 %v945_v62  ;;  %v857_v61 = vmax.f32 %v841_v56, 0.0 }
 0x297   : > { %v953_v3 = vadd.f32 1e-05, %v857_v61  ;;  %v493_v61 = vmul.f32 %v1785_v33, %v1785_v33 }
 0x298   : > { %v1915_v21 = vpop.permute.xlu1 %584 }
 0x299   : > { %1391 = vrsqrt.f32 %v953_v3 }
 0x29f   : > { %v1390_v63 = vpop.eup %1389 }
 0x2a0   : > { %v1888_v11 = vmul.f32 %v1390_v63, %v929_v10  ;;  %v536_v63 = vsel %vm429_vm1, %v492_v50, 0.0 }
 0x2a2   : > { %v444_v15 = vpop.xlane.xlu0 %443 }
 0x2a3   : > { %v1392_v17 = vpop.eup %1391  ;;  %v1890_v16 = vmul.f32 0.0625, %v444_v15 }
 0x2a4   : > { %v1895_v28 = vmul.f32 %v1392_v17, %v937_v13  ;;  %v475_v13 = vsel %vm429_vm1, %v1785_v33, 0.0  ;;  %v606_v17 = vsel %vm429_vm1, %v1750_v57, 0.0 }
 0x2a5   : > { %v930_v47 = vsub.f32 %v1728_v43, %v1890_v16 }
 0x2a6   : > { %v468_v49 = vpop.xlane.xlu0 %467 }
 0x2a7   : > { %v1899_v38 = vmul.f32 0.0625, %v468_v49 }
 0x2a9   : > { %v938_v10 = vsub.f32 %v1732_v45, %v1899_v38  ;;  %682 = vrot.lane.b32.xlu0 %v484_v2, %s1521_s21  ;;  %v630_v2 = vsel %vm429_vm1, %v1752_v58, 0.0  ;;  %v615_v58 = vsel %vm429_vm1, %v1807_v1, 0.0  ;;  %v724_v1 = vsel %vm429_vm1, %v1851_v52, 0.0 }
 0x2aa   : > { %v679_v49 = vpop.permute.xlu0 %678  ;;  %v618_v52 = vsel %vm429_vm1, %v1881_v9, 0.0  ;;  %v721_v9 = vsel %vm429_vm1, %v1767_v4, 0.0  ;;  %v639_v4 = vsel %vm429_vm1, %v1813_v5, 0.0  ;;  %v751_v5 = vsel %vm429_vm1, %v1867_v40, 0.0 }
 0x2ad   : > { %698 = vrot.lane.b32.xlu0 %v492_v50, %s1521_s21  ;;  %v742_v50 = vsel %vm429_vm1, %v1787_v34, 0.0  ;;  %v612_v34 = vsel %vm429_vm1, %v1840_v36, 0.0  ;;  %v748_v36 = vsel %vm429_vm1, %v1853_v48, 0.0  ;;  %v642_v48 = vsel %vm429_vm1, %v1883_v8, 0.0 }
 0x2ae   : > { %v745_v8 = vsel %vm429_vm1, %v1773_v7, 0.0 }
 0x2b6   : > { %452 = vadd.xlane.f32.xlu1 %v451_v12  ;;  %v695_v12 = vpop.permute.xlu0 %694 }
 0x2ba   : > { %476 = vadd.xlane.f32.xlu1 %v475_v13  ;;  %v718_v13 = vsel %vm429_vm1, %v1779_v30, 0.0 }
 0x2c9   : > { %v447_v41 = vpop.xlane.xlu1 %446 }
 0x2ca   : > { %v1919_v59 = vmul.f32 0.0625, %v447_v41 }
 0x2cb   : > { %684 = vrot.lane.b32.xlu1 %v485_v55, %s1521_s21 }
 0x2cc   : > { %v931_v62 = vsub.f32 %v1726_v42, %v1919_v59  ;;  %513 = vadd.xlane.f32.xlu0 %v512_v60  ;;  %v818_v60 = vmul.f32 %v1890_v16, %v1890_v16 }
 0x2cd   : > { %v471_v56 = vpop.xlane.xlu1 %470 }
 0x2ce   : > { %v1927_v3 = vmul.f32 0.0625, %v471_v56 }
 0x2cf   : > { %700 = vrot.lane.b32.xlu1 %v493_v61, %s1521_s21  ;;  %s1251_s21 = sshll.u32 %s1511_s18, 7  ;;  %s2221_s18 = scalar_lea.sflag [#allocation3], %s203_s8 }
 0x2d0   : > { %537 = vadd.xlane.f32.xlu0 %v536_v63  ;;  %v2274_v40 = vsub.f32 %v1730_v44, %v1927_v3  ;;  %s2212_s29 = scalar_lea.hbm %s2271_s4, %s1251_s21 }
 0x2d4   : > { %607 = vadd.xlane.f32.xlu0 %v606_v17  ;;  %v826_v17 = vmul.f32 %v1899_v38, %v1899_v38  ;;  %v730_v38 = vsel %vm429_vm1, %v679_v49, 0.0 }
 0x2d8   : > { %631 = vadd.xlane.f32.xlu0 %v630_v2 }
 0x2dc   : > { %719 = vadd.xlane.f32.xlu0 %v718_v13 }
 0x2df   : > { %v508_v41 = vpop.xlane.xlu0 %507 }
 0x2e0   : > { %v802_v56 = vmul.f32 0.0625, %v508_v41  ;;  %743 = vadd.xlane.f32.xlu0 %v742_v50  ;;  %v636_v50 = vsel %vm429_vm1, %v1827_v14, 0.0 }
 0x2e2   : > { %v834_v57 = vsub.f32 %v802_v56, %v818_v60  ;;  %v515_v56 = vsel %vm429_vm1, %v485_v55, 0.0  ;;  %v681_v55 = vpop.permute.xlu1 %680 }
 0x2e3   : > { %v532_v63 = vpop.xlane.xlu0 %531 }
 0x2e4   : > { %v850_v2 = vmax.f32 %v834_v57, 0.0  ;;  %v810_v30 = vmul.f32 0.0625, %v532_v63  ;;  %616 = vadd.xlane.f32.xlu0 %v615_v58  ;;  %v539_v63 = vsel %vm429_vm1, %v493_v61, 0.0  ;;  %v633_v61 = vsel %vm429_vm1, %v1745_v53, 0.0 }
 0x2e5   : > { %v819_v53 = vmul.f32 %v1919_v59, %v1919_v59 }
 0x2e6   : > { %v946_v13 = vadd.f32 1e-05, %v850_v2  ;;  %v842_v15 = vsub.f32 %v810_v30, %v826_v17 }
 0x2e7   : > { %v571_v58 = vpop.permute.xlu0 %570 }
 0x2e8   : > { %1393 = vrsqrt.f32 %v946_v13  ;;  %v858_v16 = vmax.f32 %v842_v15, 0.0  ;;  %613 = vadd.xlane.f32.xlu0 %v612_v34  ;;  %v624_v49 = vsel %vm429_vm1, %v571_v58, 0.0 }
 0x2ea   : > { %v954_v41 = vadd.f32 1e-05, %v858_v16 }
 0x2eb   : > { %v587_v30 = vpop.permute.xlu0 %586 }
 0x2ec   : > { %1395 = vrsqrt.f32 %v954_v41  ;;  %637 = vadd.xlane.f32.xlu0 %v636_v50  ;;  %v648_v7 = vsel %vm429_vm1, %v587_v30, 0.0 }
 0x2f0   : > { %725 = vadd.xlane.f32.xlu0 %v724_v1 }
 0x2f2   : > { %v1394_v60 = vpop.eup %1393 }
 0x2f3   : > { %v1954_v57 = vmul.f32 %v1394_v60, %v930_v47  ;;  %516 = vadd.xlane.f32.xlu1 %v515_v56  ;;  %v609_v47 = vsel %vm429_vm1, %v1741_v51, 0.0  ;;  %v754_v51 = vsel %vm429_vm1, %v695_v12, 0.0  ;;  %v827_v12 = vmul.f32 %v1927_v3, %v1927_v3 }
 0x2f4   : > { %749 = vadd.xlane.f32.xlu0 %v748_v36  ;;  %v727_v60 = vsel %vm429_vm1, %v1865_v39, 0.0  ;;  %v645_v39 = vsel %vm429_vm1, %v1915_v21, 0.0 }
 0x2f6   : > { %v1396_v15 = vpop.eup %1395 }
 0x2f7   : > { %v1962_v14 = vmul.f32 %v1396_v15, %v938_v10  ;;  %540 = vadd.xlane.f32.xlu1 %v539_v63  ;;  %v697_v10 = vpop.permute.xlu1 %696  ;;  %v621_v15 = vsel %vm429_vm1, %v1913_v54, 0.0  ;;  %v733_v54 = vsel %vm429_vm1, %v681_v55, 0.0 }
 0x2f8   : > { %619 = vadd.xlane.f32.xlu0 %v618_v52 }
 0x2fb   : > { %610 = vadd.xlane.f32.xlu1 %v609_v47 }
 0x2fc   : > { %643 = vadd.xlane.f32.xlu0 %v642_v48 }
 0x2ff   : > { %634 = vadd.xlane.f32.xlu1 %v633_v61 }
 0x300   : > { %731 = vadd.xlane.f32.xlu0 %v730_v38 }
 0x303   : > { %722 = vadd.xlane.f32.xlu1 %v721_v9 }
 0x304   : > { %755 = vadd.xlane.f32.xlu0 %v754_v51  ;;  %v757_v51 = vsel %vm429_vm1, %v697_v10, 0.0 }
 0x306   : > { %v511_v17 = vpop.xlane.xlu1 %510 }
 0x307   : > { %v803_v2 = vmul.f32 0.0625, %v511_v17  ;;  %746 = vadd.xlane.f32.xlu1 %v745_v8 }
 0x308   : > { %625 = vadd.xlane.f32.xlu0 %v624_v49 }
 0x309   : > { %v835_v13 = vsub.f32 %v803_v2, %v819_v53 }
 0x30a   : > { %v535_v34 = vpop.xlane.xlu1 %534 }
 0x30b   : > { %v851_v16 = vmax.f32 %v835_v13, 0.0  ;;  %v811_v41 = vmul.f32 0.0625, %v535_v34  ;;  %640 = vadd.xlane.f32.xlu1 %v639_v4 }
 0x30c   : > { %649 = vadd.xlane.f32.xlu0 %v648_v7 }
 0x30d   : > { %v947_v50 = vadd.f32 1e-05, %v851_v16  ;;  %v843_v1 = vsub.f32 %v811_v41, %v827_v12 }
 0x30f   : > { %1397 = vrsqrt.f32 %v947_v50  ;;  %v859_v56 = vmax.f32 %v843_v1, 0.0  ;;  %728 = vadd.xlane.f32.xlu1 %v727_v60 }
 0x311   : > { %v955_v36 = vadd.f32 1e-05, %v859_v56 }
 0x313   : > { %1399 = vrsqrt.f32 %v955_v36  ;;  %752 = vadd.xlane.f32.xlu1 %v751_v5 }
 0x317   : > { %622 = vadd.xlane.f32.xlu1 %v621_v15 }
 0x319   : > { %v1398_v63 = vpop.eup %1397 }
 0x31a   : > { %v1995_v52 = vmul.f32 %v1398_v63, %v931_v62  ;;  %v573_v62 = vpop.permute.xlu1 %572 }
 0x31b   : > { %646 = vadd.xlane.f32.xlu1 %v645_v39  ;;  %v627_v3 = vsel %vm429_vm1, %v573_v62, 0.0 }
 0x31c   : > { %v450_v47 = vpop.xlane.xlu0 %449 }
 0x31d   : > { %v1400_v48 = vpop.eup %1399  ;;  %v772_v61 = vmul.f32 0.0625, %v450_v47 }
 0x31e   : > { %v2002_v38 = vmul.f32 %v1400_v48, %v2274_v40  ;;  %v589_v53 = vpop.permute.xlu1 %588 }
 0x31f   : > { %v932_v58 = vsub.f32 %v1783_v32, %v772_v61  ;;  %734 = vadd.xlane.f32.xlu1 %v733_v54  ;;  %v651_v49 = vsel %vm429_vm1, %v589_v53, 0.0  ;;  %v820_v60 = vmul.f32 %v772_v61, %v772_v61 }
 0x320   : > { %v474_v59 = vpop.xlane.xlu0 %473 }
 0x321   : > { %v780_v9 = vmul.f32 0.0625, %v474_v59 }
 0x323   : > { %v940_v21 = vsub.f32 %v1789_v35, %v780_v9  ;;  %758 = vadd.xlane.f32.xlu1 %v757_v51  ;;  %v828_v15 = vmul.f32 %v780_v9, %v780_v9 }
 0x324   : > { %v683_v17 = vpop.permute.xlu0 %682 }
 0x325   : > { %v736_v8 = vsel %vm429_vm1, %v683_v17, 0.0 }
 0x326   : > { %737 = vadd.xlane.f32.xlu0 %v736_v8 }
 0x327   : > { %628 = vadd.xlane.f32.xlu1 %v627_v3 }
 0x328   : > { %v699_v55 = vpop.permute.xlu0 %698 }
 0x329   : > { %v760_v2 = vsel %vm429_vm1, %v699_v55, 0.0 }
 0x32a   : > { %761 = vadd.xlane.f32.xlu0 %v760_v2 }
 0x32b   : > { %652 = vadd.xlane.f32.xlu1 %v651_v49 }
 0x343   : > { %v453_v30 = vpop.xlane.xlu1 %452 }
 0x344   : > { %v2012_v10 = vmul.f32 0.0625, %v453_v30 }
 0x346   : > { %v933_v13 = vsub.f32 %v1781_v31, %v2012_v10 }
 0x347   : > { %v477_v34 = vpop.xlane.xlu1 %476 }
 0x348   : > { %v2016_v4 = vmul.f32 0.0625, %v477_v34 }
 0x34a   : > { %v941_v12 = vsub.f32 %v1785_v33, %v2016_v4 }
 0x34b   : > { %v685_v16 = vpop.permute.xlu1 %684 }
 0x34c   : > { %v739_v41 = vsel %vm429_vm1, %v685_v16, 0.0 }
 0x34d   : > { %740 = vadd.xlane.f32.xlu1 %v739_v41 }
 0x34f   : > { %v701_v7 = vpop.permute.xlu1 %700 }
 0x350   : > { %v763_v50 = vsel %vm429_vm1, %v701_v7, 0.0 }
 0x351   : > { %764 = vadd.xlane.f32.xlu1 %v763_v50 }
 0x359   : > { %v514_v1 = vpop.xlane.xlu0 %513 }
 0x35a   : > { %v804_v56 = vmul.f32 0.0625, %v514_v1 }
 0x35c   : > { %v836_v36 = vsub.f32 %v804_v56, %v820_v60 }
 0x35d   : > { %v538_v5 = vpop.xlane.xlu0 %537 }
 0x35e   : > { %v852_v63 = vmax.f32 %v836_v36, 0.0  ;;  %v812_v39 = vmul.f32 0.0625, %v538_v5 }
 0x360   : > { %v948_v47 = vadd.f32 1e-05, %v852_v63  ;;  %v844_v48 = vsub.f32 %v812_v39, %v828_v15  ;;  %v2035_v39 = vld [vmem:[%s2269_s2] ss:$0 sm:$0xff] }
 0x361   : > { %v608_v40 = vpop.xlane.xlu0 %607 }
 0x362   : > { %1401 = vrsqrt.f32 %v948_v47  ;;  %v860_v54 = vmax.f32 %v844_v48, 0.0  ;;  %v782_v51 = vmul.f32 0.0625, %v608_v40 }
 0x364   : > { %v956_v59 = vadd.f32 1e-05, %v860_v54  ;;  %v878_v8 = vmul.f32 %v782_v51, %v782_v51  ;;  %v990_v15 = vsub.f32 %v1664_v20, %v782_v51  ;;  %v2047_v20 = vld [vmem:[%s2270_s3] ss:$0 sm:$0xff] }
 0x365   : > { %v632_v62 = vpop.xlane.xlu0 %631 }
 0x366   : > { %1403 = vrsqrt.f32 %v956_v59  ;;  %v790_v3 = vmul.f32 0.0625, %v632_v62 }
 0x368   : > { %v886_v49 = vmul.f32 %v790_v3, %v790_v3  ;;  %v998_v59 = vsub.f32 %v1668_v22, %v790_v3 }
 0x369   : > { %v720_v17 = vpop.xlane.xlu0 %719 }
 0x36a   : > { %v862_v53 = vmul.f32 0.0625, %v720_v17 }
 0x36c   : > { %v1402_v61 = vpop.eup %1401  ;;  %v894_v55 = vsub.f32 %v862_v53, %v878_v8 }
 0x36d   : > { %v2022_v2 = vmul.f32 %v1402_v61, %v932_v58  ;;  %v744_v9 = vpop.xlane.xlu0 %743  ;;  %v821_v61 = vmul.f32 %v2012_v10, %v2012_v10 }
 0x36e   : > { %v910_v30 = vmax.f32 %v894_v55, 0.0  ;;  %v870_v34 = vmul.f32 0.0625, %v744_v9 }
 0x370   : > { %v1404_v16 = vpop.eup %1403  ;;  %v1006_v41 = vadd.f32 1e-05, %v910_v30  ;;  %v902_v7 = vsub.f32 %v870_v34, %v886_v49 }
 0x371   : > { %v2024_v50 = vmul.f32 %v1404_v16, %v940_v21  ;;  %v2026_v1 = vpop.xlane.xlu0 %616 }
 0x372   : > { %1405 = vrsqrt.f32 %v1006_v41  ;;  %v918_v60 = vmax.f32 %v902_v7, 0.0 }
 0x374   : > { %v1014_v56 = vadd.f32 1e-05, %v918_v60 }
 0x375   : > { %v614_v36 = vpop.xlane.xlu0 %613 }
 0x376   : > { %1407 = vrsqrt.f32 %v1014_v56  ;;  %v2028_v5 = vmul.f32 0.0625, %v614_v36  ;;  %v829_v36 = vmul.f32 %v2016_v4, %v2016_v4 }
 0x378   : > { %v880_v48 = vmul.f32 %v2028_v5, %v2028_v5 }
 0x379   : > { %v638_v58 = vpop.xlane.xlu0 %637 }
 0x37a   : > { %v2041_v40 = vmul.f32 0.0625, %v638_v58 }
 0x37c   : > { %v1406_v63 = vpop.eup %1405  ;;  %v888_v3 = vmul.f32 %v2041_v40, %v2041_v40 }
 0x37d   : > { %v1038_v21 = vmul.f32 %v1406_v63, %v990_v15  ;;  %v726_v47 = vpop.xlane.xlu0 %725 }
 0x37e   : > { %v864_v54 = vmul.f32 0.0625, %v726_v47 }
 0x37f   : > { %v1054_v62 = vsel %vm429_vm1, %v1803_v0, %v1038_v21 }
 0x380   : > { %v1408_v51 = vpop.eup %1407  ;;  %v1077_v17 = vmul.f32 %v2035_v39, %v1054_v62  ;;  %v896_v8 = vsub.f32 %v864_v54, %v880_v48  ;;  %v517_v53 = vpop.xlane.xlu1 %516 }
 0x381   : > { %v1046_v55 = vmul.f32 %v1408_v51, %v998_v59  ;;  %v805_v9 = vmul.f32 0.0625, %v517_v53  ;;  %v750_v49 = vpop.xlane.xlu0 %749 }
 0x382   : > { %v1100_v22 = vadd.f32 %v2047_v20, %v1077_v17  ;;  %v912_v30 = vmax.f32 %v896_v8, 0.0  ;;  %v872_v34 = vmul.f32 0.0625, %v750_v49 }
 0x383   : > { %v1062_v0 = vsel %vm429_vm1, %v1805_v6, %v1046_v55  ;;  %v837_v16 = vsub.f32 %v805_v9, %v821_v61 }
 0x384   : > { %1116 = vst.msk [vmem:[%s2059_s14] sm:$0xff] %vm235_vm0, %v1100_v22  ;;  %v1085_v41 = vmul.f32 %v2035_v39, %v1062_v0  ;;  %v1008_v7 = vadd.f32 1e-05, %v912_v30  ;;  %v904_v60 = vsub.f32 %v872_v34, %v888_v3  ;;  %v541_v56 = vpop.xlane.xlu1 %540  ;;  %v992_v3 = vsub.f32 %v1676_v25, %v2028_v5 }
 0x385   : > { %v853_v58 = vmax.f32 %v837_v16, 0.0  ;;  %v813_v15 = vmul.f32 0.0625, %v541_v56  ;;  %v620_v63 = vpop.xlane.xlu0 %619  ;;  %v1000_v25 = vsub.f32 %v1678_v26, %v2041_v40 }
 0x386   : > { %v1108_v6 = vadd.f32 %v2047_v20, %v1085_v41  ;;  %1409 = vrsqrt.f32 %v1008_v7  ;;  %v920_v21 = vmax.f32 %v904_v60, 0.0  ;;  %v2069_v17 = vmul.f32 0.0625, %v620_v63 }
 0x387   : > { %v949_v47 = vadd.f32 1e-05, %v853_v58  ;;  %v845_v48 = vsub.f32 %v813_v15, %v829_v36 }
 0x388   : > { %1124 = vst.msk [vmem:[%s2059_s14 + $0x40] sm:$0xff] %vm235_vm0, %v1108_v6  ;;  %v1016_v54 = vadd.f32 1e-05, %v920_v21  ;;  %v611_v59 = vpop.xlane.xlu1 %610  ;;  %v882_v9 = vmul.f32 %v2069_v17, %v2069_v17 }
 0x389   : > { %1411 = vrsqrt.f32 %v949_v47  ;;  %v861_v62 = vmax.f32 %v845_v48, 0.0  ;;  %v644_v51 = vpop.xlane.xlu0 %643  ;;  %v2071_v61 = vmul.f32 0.0625, %v611_v59 }
 0x38a   : > { %1413 = vrsqrt.f32 %v1016_v54  ;;  %v2075_v49 = vmul.f32 0.0625, %v644_v51 }
 0x38b   : > { %v957_v8 = vadd.f32 1e-05, %v861_v62  ;;  %v879_v41 = vmul.f32 %v2071_v61, %v2071_v61 }
 0x38c   : > { %v635_v53 = vpop.xlane.xlu1 %634  ;;  %v890_v36 = vmul.f32 %v2075_v49, %v2075_v49 }
 0x38d   : > { %1415 = vrsqrt.f32 %v957_v8  ;;  %v732_v55 = vpop.xlane.xlu0 %731  ;;  %v2081_v7 = vmul.f32 0.0625, %v635_v53 }
 0x38e   : > { %v866_v22 = vmul.f32 0.0625, %v732_v55 }
 0x38f   : > { %v887_v26 = vmul.f32 %v2081_v7, %v2081_v7 }
 0x390   : > { %v1410_v30 = vpop.eup %1409  ;;  %v898_v34 = vsub.f32 %v866_v22, %v882_v9  ;;  %v723_v0 = vpop.xlane.xlu1 %722 }
 0x391   : > { %v1040_v16 = vmul.f32 %v1410_v30, %v992_v3  ;;  %v863_v60 = vmul.f32 0.0625, %v723_v0  ;;  %v756_v56 = vpop.xlane.xlu0 %755  ;;  %v2109_v0 = vmul.f32 0.0625, %v2026_v1  ;;  %v994_v1 = vsub.f32 %v1728_v43, %v2069_v17 }
 0x392   : > { %v914_v58 = vmax.f32 %v898_v34, 0.0  ;;  %v874_v15 = vmul.f32 0.0625, %v756_v56 }
 0x393   : > { %v1412_v63 = vpop.eup %1411  ;;  %v1056_v5 = vsel %vm429_vm1, %v1860_v27, %v1040_v16  ;;  %v895_v6 = vsub.f32 %v863_v60, %v879_v41  ;;  %v881_v56 = vmul.f32 %v2109_v0, %v2109_v0 }
 0x394   : > { %v1414_v21 = vpop.eup %1413  ;;  %v1079_v47 = vmul.f32 %v2035_v39, %v1056_v5  ;;  %v2093_v48 = vmul.f32 %v1412_v63, %v933_v13  ;;  %v1010_v54 = vadd.f32 1e-05, %v914_v58  ;;  %v906_v59 = vsub.f32 %v874_v15, %v890_v36  ;;  %v747_v62 = vpop.xlane.xlu1 %746 }
 0x395   : > { %v1048_v51 = vmul.f32 %v1414_v21, %v1000_v25  ;;  %v911_v40 = vmax.f32 %v895_v6, 0.0  ;;  %v871_v8 = vmul.f32 0.0625, %v747_v62  ;;  %v991_v21 = vsub.f32 %v1658_v18, %v2071_v61 }
 0x396   : > { %v1102_v27 = vadd.f32 %v2047_v20, %v1079_v47  ;;  %1417 = vrsqrt.f32 %v1010_v54  ;;  %v922_v53 = vmax.f32 %v906_v59, 0.0  ;;  %v1002_v54 = vsub.f32 %v1732_v45, %v2075_v49 }
 0x397   : > { %v1416_v55 = vpop.eup %1415  ;;  %v1064_v10 = vsel %vm429_vm1, %v1863_v29, %v1048_v51  ;;  %v1007_v13 = vadd.f32 1e-05, %v911_v40  ;;  %v903_v9 = vsub.f32 %v871_v8, %v887_v26  ;;  %v999_v18 = vsub.f32 %v1660_v19, %v2081_v7 }
 0x398   : > { %1118 = vst.msk [vmem:[%s2059_s14 + $0x10] sm:$0xff] %vm235_vm0, %v1102_v27  ;;  %v1087_v22 = vmul.f32 %v2035_v39, %v1064_v10  ;;  %v2106_v3 = vmul.f32 %v1416_v55, %v941_v12  ;;  %v1018_v30 = vadd.f32 1e-05, %v922_v53  ;;  %v641_v34 = vpop.xlane.xlu1 %640 }
 0x399   : > { %1419 = vrsqrt.f32 %v1007_v13  ;;  %v919_v16 = vmax.f32 %v903_v9, 0.0  ;;  %v2116_v4 = vmul.f32 0.0625, %v641_v34  ;;  %v626_v9 = vpop.xlane.xlu0 %625 }
 0x39a   : > { %v1110_v29 = vadd.f32 %v2047_v20, %v1087_v22  ;;  %1421 = vrsqrt.f32 %v1018_v30 }
 0x39b   : > { %v1015_v41 = vadd.f32 1e-05, %v919_v16  ;;  %v889_v25 = vmul.f32 %v2116_v4, %v2116_v4 }
 0x39c   : > { %1126 = vst.msk [vmem:[%s2059_s14 + $0x50] sm:$0xff] %vm235_vm0, %v1110_v29  ;;  %v729_v60 = vpop.xlane.xlu1 %728 }
 0x39d   : > { %1423 = vrsqrt.f32 %v1015_v41  ;;  %v865_v12 = vmul.f32 0.0625, %v729_v60 }
 0x39f   : > { %v897_v36 = vsub.f32 %v865_v12, %v881_v56  ;;  %v993_v56 = vsub.f32 %v1670_v23, %v2109_v0 }
 0x3a0   : > { %v1418_v58 = vpop.eup %1417  ;;  %v753_v15 = vpop.xlane.xlu1 %752 }
 0x3a1   : > { %v1042_v63 = vmul.f32 %v1418_v58, %v994_v1  ;;  %v913_v5 = vmax.f32 %v897_v36, 0.0  ;;  %v873_v6 = vmul.f32 0.0625, %v753_v15  ;;  %v650_v1 = vpop.xlane.xlu0 %649  ;;  %v788_v36 = vmul.f32 0.0625, %v626_v9 }
 0x3a3   : > { %v1420_v47 = vpop.eup %1419  ;;  %v1058_v59 = vsel %vm429_vm1, %v1954_v57, %v1042_v63  ;;  %v1009_v43 = vadd.f32 1e-05, %v913_v5  ;;  %v905_v17 = vsub.f32 %v873_v6, %v889_v25  ;;  %v1001_v6 = vsub.f32 %v1672_v24, %v2116_v4 }
 0x3a4   : > { %v1422_v62 = vpop.eup %1421  ;;  %v1081_v51 = vmul.f32 %v2035_v39, %v1058_v59  ;;  %v1039_v26 = vmul.f32 %v1420_v47, %v991_v21  ;;  %v623_v40 = vpop.xlane.xlu1 %622 }
 0x3a5   : > { %v1050_v8 = vmul.f32 %v1422_v62, %v1002_v54  ;;  %1425 = vrsqrt.f32 %v1009_v43  ;;  %v921_v27 = vmax.f32 %v905_v17, 0.0  ;;  %v884_v43 = vmul.f32 %v788_v36, %v788_v36 }
 0x3a6   : > { %v1104_v61 = vadd.f32 %v2047_v20, %v1081_v51  ;;  %v1055_v45 = vsel %vm429_vm1, %v1791_v37, %v1039_v26  ;;  %v787_v37 = vmul.f32 0.0625, %v623_v40  ;;  %v796_v17 = vmul.f32 0.0625, %v650_v1 }
 0x3a7   : > { %v1424_v57 = vpop.eup %1423  ;;  %v1078_v49 = vmul.f32 %v2035_v39, %v1055_v45  ;;  %v1066_v53 = vsel %vm429_vm1, %v1962_v14, %v1050_v8  ;;  %v1017_v55 = vadd.f32 1e-05, %v921_v27 }
 0x3a8   : > { %1120 = vst.msk [vmem:[%s2059_s14 + $0x20] sm:$0xff] %vm235_vm0, %v1104_v61  ;;  %v1089_v10 = vmul.f32 %v2035_v39, %v1066_v53  ;;  %v1047_v13 = vmul.f32 %v1424_v57, %v999_v18  ;;  %v647_v19 = vpop.xlane.xlu1 %646  ;;  %v883_v29 = vmul.f32 %v787_v37, %v787_v37  ;;  %v892_v18 = vmul.f32 %v796_v17, %v796_v17 }
 0x3a9   : > { %v1101_v7 = vadd.f32 %v2047_v20, %v1078_v49  ;;  %1427 = vrsqrt.f32 %v1017_v55  ;;  %v795_v41 = vmul.f32 0.0625, %v647_v19  ;;  %v995_v55 = vsub.f32 %v1726_v42, %v787_v37 }
 0x3aa   : > { %v1112_v22 = vadd.f32 %v2047_v20, %v1089_v10  ;;  %v1063_v30 = vsel %vm429_vm1, %v1797_v46, %v1047_v13 }
 0x3ab   : > { %1117 = vst.msk [vmem:[%s2059_s14 + $0x8] sm:$0xff] %vm235_vm0, %v1101_v7  ;;  %v1086_v14 = vmul.f32 %v2035_v39, %v1063_v30  ;;  %v891_v63 = vmul.f32 %v795_v41, %v795_v41  ;;  %v1003_v7 = vsub.f32 %v1730_v44, %v795_v41 }
 0x3ac   : > { %1128 = vst.msk [vmem:[%s2059_s14 + $0x60] sm:$0xff] %vm235_vm0, %v1112_v22  ;;  %v735_v34 = vpop.xlane.xlu1 %734 }
 0x3ad   : > { %v1109_v16 = vadd.f32 %v2047_v20, %v1086_v14  ;;  %v867_v60 = vmul.f32 0.0625, %v735_v34  ;;  %v996_v34 = vsub.f32 %v1783_v32, %v788_v36 }
 0x3af   : > { %v1426_v12 = vpop.eup %1425  ;;  %1125 = vst.msk [vmem:[%s2059_s14 + $0x48] sm:$0xff] %vm235_vm0, %v1109_v16  ;;  %v899_v46 = vsub.f32 %v867_v60, %v883_v29  ;;  %v1004_v29 = vsub.f32 %v1789_v35, %v796_v17 }
 0x3b0   : > { %v1041_v58 = vmul.f32 %v1426_v12, %v993_v56  ;;  %v759_v15 = vpop.xlane.xlu1 %758 }
 0x3b1   : > { %v915_v25 = vmax.f32 %v899_v46, 0.0  ;;  %v875_v5 = vmul.f32 0.0625, %v759_v15 }
 0x3b2   : > { %v1057_v21 = vsel %vm429_vm1, %v1888_v11, %v1041_v58 }
 0x3b3   : > { %v1428_v47 = vpop.eup %1427  ;;  %v1080_v23 = vmul.f32 %v2035_v39, %v1057_v21  ;;  %v1011_v0 = vadd.f32 1e-05, %v915_v25  ;;  %v907_v54 = vsub.f32 %v875_v5, %v891_v63  ;;  %v738_v59 = vpop.xlane.xlu0 %737 }
 0x3b4   : > { %v1049_v62 = vmul.f32 %v1428_v47, %v1001_v6  ;;  %v868_v51 = vmul.f32 0.0625, %v738_v59  ;;  %v629_v46 = vpop.xlane.xlu1 %628 }
 0x3b5   : > { %v1103_v26 = vadd.f32 %v2047_v20, %v1080_v23  ;;  %1429 = vrsqrt.f32 %v1011_v0  ;;  %v923_v40 = vmax.f32 %v907_v54, 0.0  ;;  %v789_v58 = vmul.f32 0.0625, %v629_v46 }
 0x3b6   : > { %v1065_v24 = vsel %vm429_vm1, %v1895_v28, %v1049_v62  ;;  %v900_v4 = vsub.f32 %v868_v51, %v884_v43 }
 0x3b7   : > { %1119 = vst.msk [vmem:[%s2059_s14 + $0x18] sm:$0xff] %vm235_vm0, %v1103_v26  ;;  %v1088_v11 = vmul.f32 %v2035_v39, %v1065_v24  ;;  %v1019_v8 = vadd.f32 1e-05, %v923_v40  ;;  %v762_v27 = vpop.xlane.xlu0 %761  ;;  %v885_v63 = vmul.f32 %v789_v58, %v789_v58  ;;  %v997_v17 = vsub.f32 %v1781_v31, %v789_v58 }
 0x3b8   : > { %v916_v61 = vmax.f32 %v900_v4, 0.0  ;;  %v876_v45 = vmul.f32 0.0625, %v762_v27 }
 0x3b9   : > { %v1111_v57 = vadd.f32 %v2047_v20, %v1088_v11  ;;  %1431 = vrsqrt.f32 %v1019_v8 }
 0x3ba   : > { %v1012_v49 = vadd.f32 1e-05, %v916_v61  ;;  %v908_v53 = vsub.f32 %v876_v45, %v892_v18 }
 0x3bb   : > { %1127 = vst.msk [vmem:[%s2059_s14 + $0x58] sm:$0xff] %vm235_vm0, %v1111_v57 }
 0x3bc   : > { %1433 = vrsqrt.f32 %v1012_v49  ;;  %v924_v28 = vmax.f32 %v908_v53, 0.0 }
 0x3be   : > { %v1020_v10 = vadd.f32 1e-05, %v924_v28 }
 0x3bf   : > { %v1430_v13 = vpop.eup %1429 }
 0x3c0   : > { %v1043_v19 = vmul.f32 %v1430_v13, %v995_v55  ;;  %1435 = vrsqrt.f32 %v1020_v10 }
 0x3c2   : > { %v1059_v9 = vsel %vm429_vm1, %v1995_v52, %v1043_v19 }
 0x3c3   : > { %v1432_v22 = vpop.eup %1431  ;;  %v1082_v30 = vmul.f32 %v2035_v39, %v1059_v9 }
 0x3c4   : > { %v1051_v14 = vmul.f32 %v1432_v22, %v1003_v7 }
 0x3c5   : > { %v1105_v16 = vadd.f32 %v2047_v20, %v1082_v30 }
 0x3c6   : > { %v1434_v42 = vpop.eup %1433  ;;  %v1067_v37 = vsel %vm429_vm1, %v2002_v38, %v1051_v14 }
 0x3c7   : > { %1121 = vst.msk [vmem:[%s2059_s14 + $0x28] sm:$0xff] %vm235_vm0, %v1105_v16  ;;  %v1090_v44 = vmul.f32 %v2035_v39, %v1067_v37  ;;  %v1044_v52 = vmul.f32 %v1434_v42, %v996_v34 }
 0x3c9   : > { %v1113_v41 = vadd.f32 %v2047_v20, %v1090_v44  ;;  %v1060_v32 = vsel %vm429_vm1, %v2022_v2, %v1044_v52  ;;  %v653_v2 = vpop.xlane.xlu1 %652 }
 0x3ca   : > { %v1436_v60 = vpop.eup %1435  ;;  %v1083_v56 = vmul.f32 %v2035_v39, %v1060_v32  ;;  %v797_v25 = vmul.f32 0.0625, %v653_v2 }
 0x3cb   : > { %1129 = vst.msk [vmem:[%s2059_s14 + $0x68] sm:$0xff] %vm235_vm0, %v1113_v41  ;;  %v1052_v12 = vmul.f32 %v1436_v60, %v1004_v29 }
 0x3cc   : > { %v1106_v38 = vadd.f32 %v2047_v20, %v1083_v56  ;;  %v893_v47 = vmul.f32 %v797_v25, %v797_v25  ;;  %v1005_v26 = vsub.f32 %v1785_v33, %v797_v25 }
 0x3cd   : > { %v1068_v1 = vsel %vm429_vm1, %v2024_v50, %v1052_v12 }
 0x3ce   : > { %1122 = vst.msk [vmem:[%s2059_s14 + $0x30] sm:$0xff] %vm235_vm0, %v1106_v38  ;;  %v1091_v35 = vmul.f32 %v2035_v39, %v1068_v1 }
 0x3d0   : > { %v1114_v36 = vadd.f32 %v2047_v20, %v1091_v35 }
 0x3d2   : > { %1130 = vst.msk [vmem:[%s2059_s14 + $0x70] sm:$0xff] %vm235_vm0, %v1114_v36 }
 0x3da   : > { %v741_v15 = vpop.xlane.xlu1 %740 }
 0x3db   : > { %v869_v5 = vmul.f32 0.0625, %v741_v15 }
 0x3dd   : > { %v901_v6 = vsub.f32 %v869_v5, %v885_v63 }
 0x3de   : > { %v765_v21 = vpop.xlane.xlu1 %764 }
 0x3df   : > { %v917_v23 = vmax.f32 %v901_v6, 0.0  ;;  %v877_v50 = vmul.f32 0.0625, %v765_v21 }
 0x3e1   : > { %v1013_v0 = vadd.f32 1e-05, %v917_v23  ;;  %v909_v54 = vsub.f32 %v877_v50, %v893_v47 }
 0x3e3   : > { %1437 = vrsqrt.f32 %v1013_v0  ;;  %v925_v59 = vmax.f32 %v909_v54, 0.0 }
 0x3e5   : > { %v1021_v43 = vadd.f32 1e-05, %v925_v59 }
 0x3e7   : > { %1439 = vrsqrt.f32 %v1021_v43 }
 0x3ed   : > { %v1438_v62 = vpop.eup %1437 }
 0x3ee   : > { %v1045_v51 = vmul.f32 %v1438_v62, %v997_v17 }
 0x3f0   : > { %v1061_v40 = vsel %vm429_vm1, %v2093_v48, %v1045_v51 }
 0x3f1   : > { %v1440_v24 = vpop.eup %1439  ;;  %v1084_v4 = vmul.f32 %v2035_v39, %v1061_v40 }
 0x3f2   : > { %v1053_v11 = vmul.f32 %v1440_v24, %v1005_v26 }
 0x3f3   : > { %v1107_v8 = vadd.f32 %v2047_v20, %v1084_v4 }
 0x3f4   : > { %v1069_v31 = vsel %vm429_vm1, %v2106_v3, %v1053_v11 }
 0x3f5   : > { %1123 = vst.msk [vmem:[%s2059_s14 + $0x38] sm:$0xff] %vm235_vm0, %v1107_v8  ;;  %v1092_v27 = vmul.f32 %v2035_v39, %v1069_v31 }
 0x3f7   : > { %v1115_v33 = vadd.f32 %v2047_v20, %v1092_v27 }
 0x3f9   : > { %1131 = vst.msk [vmem:[%s2059_s14 + $0x78] sm:$0xff] %vm235_vm0, %v1115_v33 }
 0x3fa   : > { %1454 = shalt.err (!%p1451_p3)
}
 0x3fb   : > { %s1455_s8 = scalar_lea.hbm %s2212_s29, 2048  ;;  %s1459_s11 = scalar_lea.hbm %s2271_s4, 4096 }
 0x3fc   : > { %p1456_p5 = scmp.ne.s32.totalorder %s2212_s29, %s1455_s8  ;;  %p1460_p9 = scmp.lt.u32.totalorder %s2212_s29, %s2271_s4 }
 0x3fd   : > { %p1461_p10 = scmp.lt.u32.totalorder %s1459_s11, %s1455_s8  ;;  %p1463_p12 = scmp.lt.u32.totalorder %s1455_s8, %s2212_s29 }
 0x3fe   : > { %p1457_p6 = pnand %p1456_p5, %p1591_p4 }
 0x3ff   : > { %p1462_p11 = por %p1461_p10, %p1460_p9 }
 0x400   : > { %p1458_p7 = pneg %p1457_p6 }
 0x401   : > { %p1464_p13 = por %p1463_p12, %p1462_p11 }
 0x403   : > { %p1465_p0 = pnand %p1464_p13, %p1458_p7 }
 0x405   : > { %1468 = shalt.err (!%p1465_p0)
}
 0x406   : > { %s1523_s14 = smov 128   ;;  %s1524_s21 = smov 256  }
 0x407   : > { %s1525_s24 = smov 8  }
 0x408   : > { %1318 = dma.vmem_to_hbm [thread:$0]  (%p1591_p4), %s2214_s22, 2048, %s2212_s29, %s2221_s18, %s1523_s14, %s1524_s21, %s1525_s24  }
 0x409 PF: > { %p1324_p1 = scmp.ge.s32.totalorder %s1519_s20, 2  ;;  %s1163_s26 = sand.u32 1, %s1499_s15  }
 0x40a   : > { %s1164_s30 = scalar_lea.sflag [#allocation3], %s1163_s26 }
 0x40b   : > { %p1321_p2 = pnand %p1324_p1, %p1598_p8 }
 0x40d   : > { %1494 = dma.done.wait (!%p1321_p2), %s1164_s30, 2048  }
 0x40e   : > { %1496 = vsyncadd (!%p1321_p2), %s1164_s30, 4294965248  ;;  %s17_s20 = sadd.s32 1, %s1519_s20   ;;  %s2275_s15 = smov %s1503_s16 }
 0x40f   : > { %p14_p3 = scmp.ge.s32.totalorder %s17_s20, 4   ;;  %s2276_s16 = smov %s1507_s17 }
 0x410   : > { %s2277_s17 = smov %s1604_s28  ;;  %s2278_s18 = smov %s1515_s19 }
 0x411   : > { %s2279_s19 = smov %s2281_s23  ;;  %16 = sbr.rel (!%p14_p3) target bundleno = 4 (0x4), region = 72 }
 0x418   :  { %1169 = vsyncpa [#allocation3], 1 }
 0x419   :  { %1171 = vsyncpa [#allocation3 + $0x1], 1 }

</bundles_post_ra>
